<compile_context>
chip_gen: v7x
topology: tpu7x:2x2x1
jax: 0.10.0
libtpu: 0.0.40
codegen_flags: <defaults>
</compile_context>

<pallas_src>
import functools
import math

import jax
import jax.numpy as jnp
from jax import lax
from jax.experimental import pallas as pl
from jax.experimental.pallas import tpu as pltpu


# `None` is the long-supported spelling of a squeezed block dim; prefer the
# explicit pl.Squeezed() when available.
_SQUEEZED = pl.Squeezed() if hasattr(pl, "Squeezed") else None


def _round_up(a, b):
    return ((a + b - 1) // b) * b


# ----------------------------------------------------------------------------
# Kernel: add positional encoding + (optional) inverted dropout
# ----------------------------------------------------------------------------
def _pos_enc_kernel(seed_ref, x_ref, pe_ref, o_ref, *,
                    apply_dropout, keep_threshold, inv_keep,
                    use_hw_prng, grid_ndim):
    # Squeezed-batch layout: x_ref/o_ref (TS, D), pe_ref (TS, D)   -> plain add
    # Batched layout:        x_ref/o_ref (TS, B, D), pe_ref (TS, D) -> broadcast
    x = x_ref[...]
    pe = pe_ref[...].astype(x.dtype)
    if x.ndim == 3:
        pe = pe[:, None, :]                 # broadcast over batch sublanes
    y = x + pe

    if apply_dropout:
        if use_hw_prng:
            # One cheap hardware draw per tile; unique stream per grid step.
            pltpu.prng_seed(seed_ref[0],
                            *(pl.program_id(a) for a in range(grid_ndim)))
            bits = pltpu.prng_random_bits(y.shape)
            if bits.dtype != jnp.uint32:
                bits = pltpu.bitcast(bits, jnp.uint32)
        else:
            # Counter-based murmur3 fallback (interpret mode / no HW PRNG):
            # unique 32-bit stream per global element, deterministic in seed.
            step = pl.program_id(0)
            for a in range(1, grid_ndim):
                step = step * pl.num_programs(a) + pl.program_id(a)
            tile_elems = 1
            for s in y.shape:
                tile_elems *= s
            lin = lax.broadcasted_iota(jnp.uint32, y.shape, y.ndim - 1)
            stride = y.shape[-1]
            for a in range(y.ndim - 2, -1, -1):
                lin = lin + (lax.broadcasted_iota(jnp.uint32, y.shape, a)
                             * jnp.uint32(stride))
                stride *= y.shape[a]
            h = lin + step.astype(jnp.uint32) * jnp.uint32(tile_elems % (2 ** 32))
            h = h + seed_ref[0].astype(jnp.uint32) * jnp.uint32(0x9E3779B1)
            h = h ^ (h >> 16)
            h = h * jnp.uint32(0x85EBCA6B)
            h = h ^ (h >> 13)
            h = h * jnp.uint32(0xC2B2AE35)
            h = h ^ (h >> 16)
            bits = h
        keep = bits >= jnp.uint32(keep_threshold)       # P(keep) = 1 - p
        y = jnp.where(keep, y * jnp.asarray(inv_keep, dtype=y.dtype),
                      jnp.zeros_like(y))

    o_ref[...] = y.astype(o_ref.dtype)


# ----------------------------------------------------------------------------
# Buffer construction -- same math as the PyTorch __init__
# ----------------------------------------------------------------------------
def make_positional_encoding(max_len, d_model):
    position = jnp.arange(0, max_len, dtype=jnp.float32)[:, None]          # (L,1)
    div_term = jnp.exp(jnp.arange(0, d_model, 2, dtype=jnp.float32)
                       * (-math.log(10000.0) / d_model))                   # (D/2,)
    pe = jnp.zeros((max_len, d_model), dtype=jnp.float32)
    pe = pe.at[:, 0::2].set(jnp.sin(position * div_term))
    pe = pe.at[:, 1::2].set(jnp.cos(position * div_term))
    # PyTorch stores (max_len, 1, d_model); we keep (max_len, d_model) and
    # broadcast over batch in the wrapper / kernel.
    return pe


# ----------------------------------------------------------------------------
# Wrapper
# ----------------------------------------------------------------------------
def positional_encoding_forward(x, pe, *, dropout_p=0.1, training=False, seed=0,
                                block_rows=None, use_hw_prng=True,
                                squeeze_batch=None, donate_x=False,
                                x_buffer_count=2, force_pallas=False):
    """x: (S, B, D); pe: (max_len, D). Returns dropout(x + pe[:S]) like PyTorch."""
    S, B, D = x.shape
    pe_slice = pe[:S].astype(x.dtype)                      # (S, D)
    apply_dropout = bool(training) and float(dropout_p) > 0.0

    if not apply_dropout and not force_pallas:
        # Eval mode is a pure elementwise add: let XLA fuse it with neighbours
        # instead of paying a standalone x-sized HBM read+write.
        return x + pe_slice[:, None, :]

    if squeeze_batch is None:
        # B sits on the sublane axis of 3-D tiles; if not a multiple of 8 every
        # (B, D) slab pads to 8 sublanes (vreg/VMEM waste + masked stores), so
        # fold B into the grid and work on dense (rows, D) tiles instead.
        squeeze_batch = (B % 8) != 0

    itemsize = x.dtype.itemsize
    try:
        vmem_cap = int(getattr(pltpu.get_tpu_info(), "vmem_capacity_bytes",
                               64 << 20))
    except Exception:
        vmem_cap = 64 << 20                                # v7x per-TC (smallest)

    # Generation-aware block target: bigger blocks amortize the ~0.35us/step
    # overhead; v5e/v6e (128 MiB VMEM) take ~6 MiB, v7x (64 MiB) ~4 MiB.
    target_bytes = (6 << 20) if vmem_cap >= (100 << 20) else (4 << 20)
    row_bytes = (D if squeeze_batch else B * D) * itemsize

    if block_rows is None:
        block_rows = max(8, (target_bytes // max(1, row_bytes)) // 8 * 8)
        # Keep >= ~4 grid steps so both v7x TensorCores stay busy.
        tiles_wanted = max(1, -(-4 // B)) if squeeze_batch else 4
        cap = max(8, _round_up(pl.cdiv(S, tiles_wanted), 8))
        block_rows = min(block_rows, cap)
    if block_rows >= S:
        block_rows = S                      # full dim: no multiple-of-8 needed
    else:
        block_rows = max(8, (block_rows // 8) * 8)
    s_tiles = pl.cdiv(S, block_rows)

    seed_arr = jnp.asarray([seed], dtype=jnp.int32)
    keep_threshold = min(int(float(dropout_p) * (2 ** 32)), 2 ** 32 - 1)
    inv_keep = 1.0 / (1.0 - float(dropout_p)) if apply_dropout else 1.0

    def _xspec(shape, imap):
        if x_buffer_count and x_buffer_count != 2:
            return pl.BlockSpec(shape, imap,
                                pipeline_mode=pl.Buffered(int(x_buffer_count)))
        return pl.BlockSpec(shape, imap)

    if squeeze_batch:
        # Grid (S-tiles, B); b is innermost so the pe block (constant in b)
        # stays resident and is only DMA'd once per S-tile.
        grid = (s_tiles, B)
        x_spec = _xspec((block_rows, _SQUEEZED, D), lambda i, b, seed: (i, b, 0))
        pe_spec = pl.BlockSpec((block_rows, D), lambda i, b, seed: (i, 0))
        out_spec = pl.BlockSpec((block_rows, _SQUEEZED, D),
                                lambda i, b, seed: (i, b, 0))
        dim_sem = ("parallel", "arbitrary")
        slab_rows = 1
    else:
        grid = (s_tiles,)
        x_spec = _xspec((block_rows, B, D), lambda i, seed: (i, 0, 0))
        pe_spec = pl.BlockSpec((block_rows, D), lambda i, seed: (i, 0))
        out_spec = pl.BlockSpec((block_rows, B, D), lambda i, seed: (i, 0, 0))
        dim_sem = ("parallel",)
        slab_rows = _round_up(B, 8)

    # VMEM budget: double-buffered x, out and pe blocks (with (8,128) padding)
    # plus slack; raise the scoped limit but stay under the physical capacity.
    d_pad = _round_up(D, 128)
    rows_pad = _round_up(block_rows, 8)
    block_vmem = rows_pad * slab_rows * d_pad * itemsize
    pe_vmem = rows_pad * d_pad * itemsize
    vmem_needed = 2 * (2 * block_vmem + pe_vmem) + (4 << 20)
    vmem_limit = int(min(max(32 << 20, vmem_needed), vmem_cap - (4 << 20)))

    kernel = functools.partial(
        _pos_enc_kernel,
        apply_dropout=apply_dropout,
        keep_threshold=keep_threshold,
        inv_keep=inv_keep,
        use_hw_prng=use_hw_prng,
        grid_ndim=len(grid),
    )

    # Mem-bound: read x + pe, write y; one add (+ dropout select) per element.
    cost = pl.CostEstimate(
        flops=2 * x.size,
        transcendentals=0,
        bytes_accessed=2 * x.size * itemsize + pe_slice.size * itemsize,
    )

    call = pl.pallas_call(
        kernel,
        out_shape=jax.ShapeDtypeStruct((S, B, D), x.dtype),
        grid_spec=pltpu.PrefetchScalarGridSpec(
            num_scalar_prefetch=1,             # seed -> SMEM
            grid=grid,
            in_specs=[x_spec, pe_spec],
            out_specs=out_spec,
        ),
        compiler_params=pltpu.CompilerParams(
            dimension_semantics=dim_sem,
            vmem_limit_bytes=vmem_limit,
        ),
        cost_estimate=cost,
        # Operand order is (seed, x, pe); aliasing x (index 1) onto output 0
        # donates x's HBM buffer when the caller no longer needs it.
        input_output_aliases=({1: 0} if donate_x else {}),
    )
    return call(seed_arr, x, pe_slice)


# ----------------------------------------------------------------------------
# Self-test
# ----------------------------------------------------------------------------
if __name__ == "__main__":
    # Small shapes consistent with the module: seq=8, batch=2, d_model=32.
    S, B, D = 8, 2, 32
    MAX_LEN = 16
    DROPOUT_P = 0.1

    key = jax.random.PRNGKey(0)
    x = jax.random.normal(key, (S, B, D), dtype=jnp.float32)
    pe = make_positional_encoding(MAX_LEN, D)
    ref = x + pe[:S][:, None, :]

    def run(**kwargs):
        # Portability ladder: prefer the fully optimized configuration
        # (squeezed-batch tiles + hardware PRNG); fall back to the previously
        # proven batched-3D / hash-PRNG variants if a lowering is unavailable.
        configs = (
            {},                                              # auto layout, HW PRNG
            {"use_hw_prng": False},                          # auto layout, hash
            {"squeeze_batch": False},                        # batched, HW PRNG
            {"squeeze_batch": False, "use_hw_prng": False},  # batched, hash
        )
        err = None
        for cfg in configs:
            try:
                return jax.block_until_ready(
                    positional_encoding_forward(x, pe, **{**kwargs, **cfg}))
            except Exception as e:          # pragma: no cover - portability only
                err = e
        raise err

    # 1) Eval mode, default path (plain-JAX fused add; no Pallas).
    out_eval = jax.block_until_ready(
        positional_encoding_forward(x, pe, dropout_p=DROPOUT_P, training=False))
    assert out_eval.shape == (S, B, D)
    assert jnp.allclose(out_eval, ref, atol=1e-6, rtol=1e-6), "eval fused mismatch"

    # 2) Eval mode forced through the Pallas kernel -- exact check of the add.
    out_eval_k = run(dropout_p=DROPOUT_P, training=False, force_pallas=True)
    assert out_eval_k.shape == (S, B, D)
    assert jnp.allclose(out_eval_k, ref, atol=1e-6, rtol=1e-6), "eval kernel mismatch"

    # 3) Training mode with in-kernel inverted dropout.
    out_train = run(dropout_p=DROPOUT_P, training=True, seed=1234)
    assert out_train.shape == (S, B, D)
    keep_mask = out_train != 0
    # Every surviving element equals ref / (1 - p); dropped elements are 0.
    assert jnp.allclose(
        jnp.where(keep_mask, out_train * (1.0 - DROPOUT_P), 0.0),
        jnp.where(keep_mask, ref, 0.0),
        atol=1e-5, rtol=1e-5,
    ), "training-mode dropout scaling mismatch"
    # Sanity: with p=0.1 most elements survive.
    assert float(keep_mask.mean()) > 0.5, "dropout dropped far too many elements"

    print("KERNEL_OK")
</pallas_src>

<mosaic_0001>
module attributes {stable_mosaic.version = 11 : i64} {
  func.func @_pos_enc_kernel(%arg0: i32, %arg1: memref<1xi32, #tpu.memory_space<smem>>, %arg2: memref<8x2x32xf32, #tpu.memory_space<vmem>>, %arg3: memref<8x32xf32, #tpu.memory_space<vmem>>, %arg4: memref<8x2x32xf32, #tpu.memory_space<vmem>>) attributes {dimension_semantics = [#tpu.dimension_semantics<parallel>], iteration_bounds = array<i64: 1>, scalar_prefetch = 1 : i64, scratch_operands = 0 : i64, tpu.core_type = #tpu.core_type<tc>, window_params = [{transform_indices = @transform_0, window_bounds = array<i64: 8, 2, 32>}, {transform_indices = @transform_1, window_bounds = array<i64: 8, 32>}, {transform_indices = @transform_2, window_bounds = array<i64: 8, 2, 32>}]} {
    %c0 = arith.constant 0 : index
    %c0_0 = arith.constant 0 : index
    %c0_1 = arith.constant 0 : index
    %0 = vector.load %arg2[%c0, %c0_0, %c0_1] : memref<8x2x32xf32, #tpu.memory_space<vmem>>, vector<8x2x32xf32>
    %c0_2 = arith.constant 0 : index
    %c0_3 = arith.constant 0 : index
    %1 = vector.load %arg3[%c0_2, %c0_3] : memref<8x32xf32, #tpu.memory_space<vmem>>, vector<8x32xf32>
    %2 = vector.shape_cast %1 : vector<8x32xf32> to vector<8x1x32xf32>
    %3 = vector.broadcast %2 : vector<8x1x32xf32> to vector<8x2x32xf32>
    %4 = arith.addf %0, %3 : vector<8x2x32xf32>
    %c0_4 = arith.constant 0 : index
    %c0_5 = arith.constant 0 : index
    %c0_6 = arith.constant 0 : index
    %5 = vector.load %arg4[%c0_4, %c0_5, %c0_6] : memref<8x2x32xf32, #tpu.memory_space<vmem>>, vector<8x2x32xf32>
    tpu.vector_store %arg4[%c0_4, %c0_5, %c0_6], %4 {strides = array<i32>} : memref<8x2x32xf32, #tpu.memory_space<vmem>>, vector<8x2x32xf32>,
    return
  }
  func.func @transform_0(%arg0: i32, %arg1: memref<1xi32, #tpu.memory_space<smem>>) -> (i32, i32, i32) {
    %c0_i32 = arith.constant 0 : i32
    %c0_i32_0 = arith.constant 0 : i32
    %c0_i32_1 = arith.constant 0 : i32
    return %arg0, %c0_i32, %c0_i32_0 : i32, i32, i32
  }
  func.func @transform_1(%arg0: i32, %arg1: memref<1xi32, #tpu.memory_space<smem>>) -> (i32, i32) {
    %c0_i32 = arith.constant 0 : i32
    %c0_i32_0 = arith.constant 0 : i32
    return %arg0, %c0_i32 : i32, i32
  }
  func.func @transform_2(%arg0: i32, %arg1: memref<1xi32, #tpu.memory_space<smem>>) -> (i32, i32, i32) {
    %c0_i32 = arith.constant 0 : i32
    %c0_i32_0 = arith.constant 0 : i32
    %c0_i32_1 = arith.constant 0 : i32
    return %arg0, %c0_i32, %c0_i32_0 : i32, i32, i32
  }
}

module attributes {stable_mosaic.version = 11 : i64} {
  func.func @_pos_enc_kernel(%arg0: i32, %arg1: memref<1xi32, #tpu.memory_space<smem>>, %arg2: memref<8x2x32xf32, #tpu.memory_space<vmem>>, %arg3: memref<8x32xf32, #tpu.memory_space<vmem>>, %arg4: memref<8x2x32xf32, #tpu.memory_space<vmem>>) attributes {dimension_semantics = [#tpu.dimension_semantics<parallel>], iteration_bounds = array<i64: 1>, scalar_prefetch = 1 : i64, scratch_operands = 0 : i64, tpu.core_type = #tpu.core_type<tc>, window_params = [{transform_indices = @transform_0, window_bounds = array<i64: 8, 2, 32>}, {transform_indices = @transform_1, window_bounds = array<i64: 8, 32>}, {transform_indices = @transform_2, window_bounds = array<i64: 8, 2, 32>}]} {
    %c0 = arith.constant 0 : index
    %c0_0 = arith.constant 0 : index
    %c0_1 = arith.constant 0 : index
    %0 = vector.load %arg2[%c0, %c0_0, %c0_1] : memref<8x2x32xf32, #tpu.memory_space<vmem>>, vector<8x2x32xf32>
    %c0_2 = arith.constant 0 : index
    %c0_3 = arith.constant 0 : index
    %1 = vector.load %arg3[%c0_2, %c0_3] : memref<8x32xf32, #tpu.memory_space<vmem>>, vector<8x32xf32>
    %2 = vector.shape_cast %1 : vector<8x32xf32> to vector<8x1x32xf32>
    %3 = vector.broadcast %2 : vector<8x1x32xf32> to vector<8x2x32xf32>
    %4 = arith.addf %0, %3 : vector<8x2x32xf32>
    %c0_4 = arith.constant 0 : index
    %c0_5 = arith.constant 0 : index
    %c0_6 = arith.constant 0 : index
    %5 = vector.load %arg4[%c0_4, %c0_5, %c0_6] : memref<8x2x32xf32, #tpu.memory_space<vmem>>, vector<8x2x32xf32>
    tpu.vector_store %arg4[%c0_4, %c0_5, %c0_6], %4 {strides = array<i32>} : memref<8x2x32xf32, #tpu.memory_space<vmem>>, vector<8x2x32xf32>,
    return
  }
  func.func @transform_0(%arg0: i32, %arg1: memref<1xi32, #tpu.memory_space<smem>>) -> (i32, i32, i32) {
    %c0_i32 = arith.constant 0 : i32
    %c0_i32_0 = arith.constant 0 : i32
    %c0_i32_1 = arith.constant 0 : i32
    return %arg0, %c0_i32, %c0_i32_0 : i32, i32, i32
  }
  func.func @transform_1(%arg0: i32, %arg1: memref<1xi32, #tpu.memory_space<smem>>) -> (i32, i32) {
    %c0_i32 = arith.constant 0 : i32
    %c0_i32_0 = arith.constant 0 : i32
    return %arg0, %c0_i32 : i32, i32
  }
  func.func @transform_2(%arg0: i32, %arg1: memref<1xi32, #tpu.memory_space<smem>>) -> (i32, i32, i32) {
    %c0_i32 = arith.constant 0 : i32
    %c0_i32_0 = arith.constant 0 : i32
    %c0_i32_1 = arith.constant 0 : i32
    return %arg0, %c0_i32, %c0_i32_0 : i32, i32, i32
  }
}

</mosaic_0001>

<bundles_post_ra>
// kernel: tpu_custom_call.1
= control target key start
LH: loop header
LB: loop body
LE: loop exit
PB: predicated region body
PF: predicated region fallthrough
CT: control target
= control target key end

     0   :  { %9 = vsyncpa [#allocation5], 0  ;;  %s328_s0 = inlined_call_operand.<no memory space> [shape: s32[1], index: 0, kind: input, shape index: {}]   ;;  %s329_s1 = inlined_call_operand.hbm [shape: f32[8,2,32], index: 1, kind: input, shape index: {}]   ;;  %s330_s2 = inlined_call_operand.hbm [shape: f32[8,32], index: 2, kind: input, shape index: {}]   ;;  %s331_s3 = inlined_call_operand.hbm [shape: f32[8,2,32], index: 3, kind: output, shape index: {}]  }
   0x1   :  { %10 = vsyncpa [#allocation8], 0 }
   0x2   :  { %11 = vsyncpa [#allocation6], 0  ;;  %s252_s12 = smov [#allocation4]   ;;  %s180_s16 = scalar_lea.hbm %s329_s1, 256 }
   0x3   :  { %s17_s13 = sshll.u32 %s252_s12, 4  ;;  %p181_p0 = scmp.ne.s32.totalorder %s329_s1, %s180_s16  ;;  %s18_s13 = int_to_ptr.vmem [resolvable:$true] %s17_s13 }
   0x4   :  { %p184_p1 = scmp.lt.u32.totalorder %s180_s16, %s329_s1 }
   0x6   :  { %p186_p2 = pnand %p184_p1, %p181_p0 }
   0x8   :  { %189 = shalt.err (!%p186_p2)
}
   0x9   :  { %s190_s20 = scalar_lea.vmem %s18_s13, 256  ;;  %p195_p4 = scmp.lt.s32.totalorder %s18_s13, %s18_s13 }
   0xa   :  { %p191_p3 = scmp.ne.s32.totalorder %s18_s13, %s190_s20  ;;  %p196_p5 = scmp.lt.s32.totalorder %s190_s20, %s190_s20 }
   0xc   :  { %p197_p6 = por %p196_p5, %p195_p4 }
   0xe   :  { %p198_p7 = pnand %p197_p6, %p191_p3 }
  0x10   :  { %201 = shalt.err (!%p198_p7)
}
  0x11   :  { %s253_s21 = smov 32   ;;  %s254_s22 = smov 2  }
  0x12   :  { %23 = dma.hbm_to_vmem [thread:$0]  %s329_s1, 256, %s18_s13, [#allocation5], %s253_s21, %s253_s21, %s254_s22  }
  0x13   :  { %s255_s25 = smov [#allocation7]   ;;  %s202_s29 = scalar_lea.hbm %s330_s2, 128 }
  0x14   :  { %s30_s26 = sshll.u32 %s255_s25, 4  ;;  %p203_p8 = scmp.ne.s32.totalorder %s330_s2, %s202_s29  ;;  %s31_s26 = int_to_ptr.vmem [resolvable:$true] %s30_s26 }
  0x15   :  { %p206_p9 = scmp.lt.u32.totalorder %s202_s29, %s330_s2 }
  0x17   :  { %p208_p10 = pnand %p206_p9, %p203_p8 }
  0x19   :  { %211 = shalt.err (!%p208_p10)
}
  0x1a   :  { %s212_s7 = scalar_lea.vmem %s31_s26, 128  ;;  %p217_p12 = scmp.lt.s32.totalorder %s31_s26, %s31_s26 }
  0x1b   :  { %p213_p11 = scmp.ne.s32.totalorder %s31_s26, %s212_s7  ;;  %p218_p13 = scmp.lt.s32.totalorder %s212_s7, %s212_s7 }
  0x1d   :  { %p219_p0 = por %p218_p13, %p217_p12 }
  0x1f   :  { %p220_p1 = pnand %p219_p0, %p213_p11 }
  0x21   :  { %223 = shalt.err (!%p220_p1)
}
  0x22   :  { %33 = dma.hbm_to_vmem [thread:$0]  %s330_s2, 128, %s31_s26, [#allocation8]  }
  0x23   :  { %246 = dma.done.wait [#allocation5], 256  }
  0x24   :  { %247 = vsyncadd [#allocation5], 4294967040 }
  0x25   :  { %248 = dma.done.wait [#allocation8], 128  }
  0x26   :  { %249 = vsyncadd [#allocation8], 4294967168  ;;  %v54_v0 = vlaneseq  ;;  %v256_v1 = vmov 1966171168   ;;  %v48_v6 = vld [vmem:[#allocation7] sm:$0xff]  ;;  %vm147_vm0 = vcmask 254976  }
  0x27   :  { %v52_v2 = vunpack.c.l.s4 %v256_v1  ;;  %v50_v9 = vcombine.high %v48_v6, %v48_v6  ;;  %v40_v13 = vld [vmem:[#allocation4] sm:$0x3]  ;;  %v41_v18 = vld [vmem:[#allocation4 + $0x2] sm:$0x3]  ;;  %v42_v19 = vld [vmem:[#allocation4 + $0x4] sm:$0x3] }
  0x28   :  { %v55_v3 = vshrl.u32 %v54_v0, 7  ;;  %v44_v25 = vld [vmem:[#allocation4 + $0x8] sm:$0x3]  ;;  %v43_v26 = vld [vmem:[#allocation4 + $0x6] sm:$0x3]  ;;  %s257_s2 = smov [#allocation9]  }
  0x29   :  { %v53_v4 = vunpack.c.0.s8 %v52_v2  ;;  %v45_v33 = vld [vmem:[#allocation4 + $0xa] sm:$0x3]  ;;  %v46_v34 = vld [vmem:[#allocation4 + $0xc] sm:$0x3]  ;;  %v47_v40 = vld [vmem:[#allocation4 + $0xe] sm:$0x3] }
  0x2a   :  { %v101_v8 = vsub.s32 0, %v55_v3  ;;  %s161_s9 = sshll.u32 %s257_s2, 4  ;;  %s162_s9 = int_to_ptr.vmem [resolvable:$true] %s161_s9 }
  0x2b   :  { %v56_v5 = vsub.s32 %v53_v4, %v55_v3  ;;  %s224_s10 = scalar_lea.vmem %s162_s9, 256  ;;  %p229_p3 = scmp.lt.s32.totalorder %s162_s9, %s162_s9 }
  0x2c   :  { %p225_p2 = scmp.ne.s32.totalorder %s162_s9, %s224_s10  ;;  %p230_p4 = scmp.lt.s32.totalorder %s224_s10, %s224_s10 }
  0x2d   :  { %v57_v7 = vrot.slane %v48_v6, %v56_v5  ;;  %v64_v12 = vrot.slane %v50_v9, %v56_v5 }
  0x2e   :  { %p231_p5 = por %p230_p4, %p229_p3 }
  0x2f   :  { %v73_v10 = vrot.slane %v57_v7, %v56_v5  ;;  %v65_v11 = vcombine.high %v57_v7, %v57_v7  ;;  %v80_v17 = vrot.slane %v64_v12, %v56_v5  ;;  %v66_v20 = vcombine.high %v64_v12, %v64_v12 }
  0x30   :  { %p232_p6 = pnand %p231_p5, %p225_p2 }
  0x31   :  { %v102_v14 = vrot.slane %v73_v10, %v101_v8  ;;  %v87_v15 = vrot.slane %v65_v11, %v56_v5  ;;  %v95_v16 = vcombine.high %v73_v10, %v73_v10  ;;  %v118_v27 = vrot.slane %v80_v17, %v101_v8 }
  0x32   :  { %v94_v28 = vrot.slane %v66_v20, %v56_v5  ;;  %v96_v29 = vcombine.high %v80_v17, %v80_v17 }
  0x33   :  { %v139_v21 = vadd.f32 %v102_v14, %v40_v13  ;;  %v106_v22 = vrot.slane %v87_v15, %v101_v8  ;;  %v110_v23 = vrot.slane %v95_v16, %v101_v8  ;;  %v97_v24 = vcombine.high %v87_v15, %v87_v15 }
  0x34   :  { %v143_v35 = vadd.f32 %v118_v27, %v44_v25  ;;  %v122_v36 = vrot.slane %v94_v28, %v101_v8  ;;  %v126_v37 = vrot.slane %v96_v29, %v101_v8  ;;  %v98_v38 = vcombine.high %v94_v28, %v94_v28 }
  0x35   :  { %148 = vst.msk [vmem:[#allocation9] sm:$0x3] %vm147_vm0, %v139_v21  ;;  %v140_v30 = vadd.f32 %v106_v22, %v41_v18  ;;  %v141_v31 = vadd.f32 %v110_v23, %v42_v19  ;;  %v114_v32 = vrot.slane %v97_v24, %v101_v8 }
  0x36   :  { %152 = vst.msk [vmem:[#allocation9 + $0x8] sm:$0x3] %vm147_vm0, %v143_v35  ;;  %v144_v41 = vadd.f32 %v122_v36, %v45_v33  ;;  %v145_v42 = vadd.f32 %v126_v37, %v46_v34  ;;  %v130_v43 = vrot.slane %v98_v38, %v101_v8 }
  0x37   :  { %149 = vst.msk [vmem:[#allocation9 + $0x2] sm:$0x3] %vm147_vm0, %v140_v30  ;;  %150 = vst.msk [vmem:[#allocation9 + $0x4] sm:$0x3] %vm147_vm0, %v141_v31  ;;  %v142_v39 = vadd.f32 %v114_v32, %v43_v26 }
  0x38   :  { %153 = vst.msk [vmem:[#allocation9 + $0xa] sm:$0x3] %vm147_vm0, %v144_v41  ;;  %154 = vst.msk [vmem:[#allocation9 + $0xc] sm:$0x3] %vm147_vm0, %v145_v42  ;;  %v146_v44 = vadd.f32 %v130_v43, %v47_v40 }
  0x39   :  { %151 = vst.msk [vmem:[#allocation9 + $0x6] sm:$0x3] %vm147_vm0, %v142_v39 }
  0x3a   :  { %155 = vst.msk [vmem:[#allocation9 + $0xe] sm:$0x3] %vm147_vm0, %v146_v44 }
  0x3b   :  { %235 = shalt.err (!%p232_p6)
}
  0x3c   :  { %s236_s13 = scalar_lea.hbm %s331_s3, 256 }
  0x3d   :  { %p237_p7 = scmp.ne.s32.totalorder %s331_s3, %s236_s13  ;;  %p240_p8 = scmp.lt.u32.totalorder %s236_s13, %s331_s3 }
  0x3f   :  { %p242_p9 = pnand %p240_p8, %p237_p7 }
  0x41   :  { %245 = shalt.err (!%p242_p9)
}
  0x42   :  { %167 = dma.vmem_to_hbm [thread:$0]  %s162_s9, 256, %s331_s3, [#allocation6], %s253_s21, %s253_s21, %s254_s22  }
  0x43   :  { %250 = dma.done.wait [#allocation6], 256  }
  0x44   :  { %251 = vsyncadd [#allocation6], 4294967040 }
  0x45   :  { %171 = vsyncpa [#allocation5], 1 }
  0x46   :  { %172 = vsyncpa [#allocation8], 1 }
  0x47   :  { %173 = vsyncpa [#allocation6], 1 }

// kernel: tpu_custom_call.1
= control target key start
LH: loop header
LB: loop body
LE: loop exit
PB: predicated region body
PF: predicated region fallthrough
CT: control target
= control target key end

     0   :  { %9 = vsyncpa [#allocation5], 0  ;;  %s328_s0 = inlined_call_operand.<no memory space> [shape: s32[1], index: 0, kind: input, shape index: {}]   ;;  %s329_s1 = inlined_call_operand.hbm [shape: f32[8,2,32], index: 1, kind: input, shape index: {}]   ;;  %s330_s2 = inlined_call_operand.hbm [shape: f32[8,32], index: 2, kind: input, shape index: {}]   ;;  %s331_s3 = inlined_call_operand.hbm [shape: f32[8,2,32], index: 3, kind: output, shape index: {}]  }
   0x1   :  { %10 = vsyncpa [#allocation8], 0 }
   0x2   :  { %11 = vsyncpa [#allocation6], 0  ;;  %s252_s12 = smov [#allocation4]   ;;  %s180_s16 = scalar_lea.hbm %s329_s1, 256 }
   0x3   :  { %s17_s13 = sshll.u32 %s252_s12, 4  ;;  %p181_p0 = scmp.ne.s32.totalorder %s329_s1, %s180_s16  ;;  %s18_s13 = int_to_ptr.vmem [resolvable:$true] %s17_s13 }
   0x4   :  { %p184_p1 = scmp.lt.u32.totalorder %s180_s16, %s329_s1 }
   0x6   :  { %p186_p2 = pnand %p184_p1, %p181_p0 }
   0x8   :  { %189 = shalt.err (!%p186_p2)
}
   0x9   :  { %s190_s20 = scalar_lea.vmem %s18_s13, 256  ;;  %p195_p4 = scmp.lt.s32.totalorder %s18_s13, %s18_s13 }
   0xa   :  { %p191_p3 = scmp.ne.s32.totalorder %s18_s13, %s190_s20  ;;  %p196_p5 = scmp.lt.s32.totalorder %s190_s20, %s190_s20 }
   0xc   :  { %p197_p6 = por %p196_p5, %p195_p4 }
   0xe   :  { %p198_p7 = pnand %p197_p6, %p191_p3 }
  0x10   :  { %201 = shalt.err (!%p198_p7)
}
  0x11   :  { %s253_s21 = smov 32   ;;  %s254_s22 = smov 2  }
  0x12   :  { %23 = dma.hbm_to_vmem [thread:$0]  %s329_s1, 256, %s18_s13, [#allocation5], %s253_s21, %s253_s21, %s254_s22  }
  0x13   :  { %s255_s25 = smov [#allocation7]   ;;  %s202_s29 = scalar_lea.hbm %s330_s2, 128 }
  0x14   :  { %s30_s26 = sshll.u32 %s255_s25, 4  ;;  %p203_p8 = scmp.ne.s32.totalorder %s330_s2, %s202_s29  ;;  %s31_s26 = int_to_ptr.vmem [resolvable:$true] %s30_s26 }
  0x15   :  { %p206_p9 = scmp.lt.u32.totalorder %s202_s29, %s330_s2 }
  0x17   :  { %p208_p10 = pnand %p206_p9, %p203_p8 }
  0x19   :  { %211 = shalt.err (!%p208_p10)
}
  0x1a   :  { %s212_s7 = scalar_lea.vmem %s31_s26, 128  ;;  %p217_p12 = scmp.lt.s32.totalorder %s31_s26, %s31_s26 }
  0x1b   :  { %p213_p11 = scmp.ne.s32.totalorder %s31_s26, %s212_s7  ;;  %p218_p13 = scmp.lt.s32.totalorder %s212_s7, %s212_s7 }
  0x1d   :  { %p219_p0 = por %p218_p13, %p217_p12 }
  0x1f   :  { %p220_p1 = pnand %p219_p0, %p213_p11 }
  0x21   :  { %223 = shalt.err (!%p220_p1)
}
  0x22   :  { %33 = dma.hbm_to_vmem [thread:$0]  %s330_s2, 128, %s31_s26, [#allocation8]  }
  0x23   :  { %246 = dma.done.wait [#allocation5], 256  }
  0x24   :  { %247 = vsyncadd [#allocation5], 4294967040 }
  0x25   :  { %248 = dma.done.wait [#allocation8], 128  }
  0x26   :  { %249 = vsyncadd [#allocation8], 4294967168  ;;  %v54_v0 = vlaneseq  ;;  %v256_v1 = vmov 1966171168   ;;  %v48_v6 = vld [vmem:[#allocation7] sm:$0xff]  ;;  %vm147_vm0 = vcmask 254976  }
  0x27   :  { %v52_v2 = vunpack.c.l.s4 %v256_v1  ;;  %v50_v9 = vcombine.high %v48_v6, %v48_v6  ;;  %v40_v13 = vld [vmem:[#allocation4] sm:$0x3]  ;;  %v41_v18 = vld [vmem:[#allocation4 + $0x2] sm:$0x3]  ;;  %v42_v19 = vld [vmem:[#allocation4 + $0x4] sm:$0x3] }
  0x28   :  { %v55_v3 = vshrl.u32 %v54_v0, 7  ;;  %v44_v25 = vld [vmem:[#allocation4 + $0x8] sm:$0x3]  ;;  %v43_v26 = vld [vmem:[#allocation4 + $0x6] sm:$0x3]  ;;  %s257_s2 = smov [#allocation9]  }
  0x29   :  { %v53_v4 = vunpack.c.0.s8 %v52_v2  ;;  %v45_v33 = vld [vmem:[#allocation4 + $0xa] sm:$0x3]  ;;  %v46_v34 = vld [vmem:[#allocation4 + $0xc] sm:$0x3]  ;;  %v47_v40 = vld [vmem:[#allocation4 + $0xe] sm:$0x3] }
  0x2a   :  { %v101_v8 = vsub.s32 0, %v55_v3  ;;  %s161_s9 = sshll.u32 %s257_s2, 4  ;;  %s162_s9 = int_to_ptr.vmem [resolvable:$true] %s161_s9 }
  0x2b   :  { %v56_v5 = vsub.s32 %v53_v4, %v55_v3  ;;  %s224_s10 = scalar_lea.vmem %s162_s9, 256  ;;  %p229_p3 = scmp.lt.s32.totalorder %s162_s9, %s162_s9 }
  0x2c   :  { %p225_p2 = scmp.ne.s32.totalorder %s162_s9, %s224_s10  ;;  %p230_p4 = scmp.lt.s32.totalorder %s224_s10, %s224_s10 }
  0x2d   :  { %v57_v7 = vrot.slane %v48_v6, %v56_v5  ;;  %v64_v12 = vrot.slane %v50_v9, %v56_v5 }
  0x2e   :  { %p231_p5 = por %p230_p4, %p229_p3 }
  0x2f   :  { %v73_v10 = vrot.slane %v57_v7, %v56_v5  ;;  %v65_v11 = vcombine.high %v57_v7, %v57_v7  ;;  %v80_v17 = vrot.slane %v64_v12, %v56_v5  ;;  %v66_v20 = vcombine.high %v64_v12, %v64_v12 }
  0x30   :  { %p232_p6 = pnand %p231_p5, %p225_p2 }
  0x31   :  { %v102_v14 = vrot.slane %v73_v10, %v101_v8  ;;  %v87_v15 = vrot.slane %v65_v11, %v56_v5  ;;  %v95_v16 = vcombine.high %v73_v10, %v73_v10  ;;  %v118_v27 = vrot.slane %v80_v17, %v101_v8 }
  0x32   :  { %v94_v28 = vrot.slane %v66_v20, %v56_v5  ;;  %v96_v29 = vcombine.high %v80_v17, %v80_v17 }
  0x33   :  { %v139_v21 = vadd.f32 %v102_v14, %v40_v13  ;;  %v106_v22 = vrot.slane %v87_v15, %v101_v8  ;;  %v110_v23 = vrot.slane %v95_v16, %v101_v8  ;;  %v97_v24 = vcombine.high %v87_v15, %v87_v15 }
  0x34   :  { %v143_v35 = vadd.f32 %v118_v27, %v44_v25  ;;  %v122_v36 = vrot.slane %v94_v28, %v101_v8  ;;  %v126_v37 = vrot.slane %v96_v29, %v101_v8  ;;  %v98_v38 = vcombine.high %v94_v28, %v94_v28 }
  0x35   :  { %148 = vst.msk [vmem:[#allocation9] sm:$0x3] %vm147_vm0, %v139_v21  ;;  %v140_v30 = vadd.f32 %v106_v22, %v41_v18  ;;  %v141_v31 = vadd.f32 %v110_v23, %v42_v19  ;;  %v114_v32 = vrot.slane %v97_v24, %v101_v8 }
  0x36   :  { %152 = vst.msk [vmem:[#allocation9 + $0x8] sm:$0x3] %vm147_vm0, %v143_v35  ;;  %v144_v41 = vadd.f32 %v122_v36, %v45_v33  ;;  %v145_v42 = vadd.f32 %v126_v37, %v46_v34  ;;  %v130_v43 = vrot.slane %v98_v38, %v101_v8 }
  0x37   :  { %149 = vst.msk [vmem:[#allocation9 + $0x2] sm:$0x3] %vm147_vm0, %v140_v30  ;;  %150 = vst.msk [vmem:[#allocation9 + $0x4] sm:$0x3] %vm147_vm0, %v141_v31  ;;  %v142_v39 = vadd.f32 %v114_v32, %v43_v26 }
  0x38   :  { %153 = vst.msk [vmem:[#allocation9 + $0xa] sm:$0x3] %vm147_vm0, %v144_v41  ;;  %154 = vst.msk [vmem:[#allocation9 + $0xc] sm:$0x3] %vm147_vm0, %v145_v42  ;;  %v146_v44 = vadd.f32 %v130_v43, %v47_v40 }
  0x39   :  { %151 = vst.msk [vmem:[#allocation9 + $0x6] sm:$0x3] %vm147_vm0, %v142_v39 }
  0x3a   :  { %155 = vst.msk [vmem:[#allocation9 + $0xe] sm:$0x3] %vm147_vm0, %v146_v44 }
  0x3b   :  { %235 = shalt.err (!%p232_p6)
}
  0x3c   :  { %s236_s13 = scalar_lea.hbm %s331_s3, 256 }
  0x3d   :  { %p237_p7 = scmp.ne.s32.totalorder %s331_s3, %s236_s13  ;;  %p240_p8 = scmp.lt.u32.totalorder %s236_s13, %s331_s3 }
  0x3f   :  { %p242_p9 = pnand %p240_p8, %p237_p7 }
  0x41   :  { %245 = shalt.err (!%p242_p9)
}
  0x42   :  { %167 = dma.vmem_to_hbm [thread:$0]  %s162_s9, 256, %s331_s3, [#allocation6], %s253_s21, %s253_s21, %s254_s22  }
  0x43   :  { %250 = dma.done.wait [#allocation6], 256  }
  0x44   :  { %251 = vsyncadd [#allocation6], 4294967040 }
  0x45   :  { %171 = vsyncpa [#allocation5], 1 }
  0x46   :  { %172 = vsyncpa [#allocation8], 1 }
  0x47   :  { %173 = vsyncpa [#allocation6], 1 }

</bundles_post_ra>
